<compile_context>
chip_gen: v5e
topology: v5e:2x2
jax: 0.10.0
libtpu: 0.0.40
codegen_flags: <defaults>
</compile_context>

<pallas_src>
import functools
from typing import NamedTuple, Optional

import jax
import jax.numpy as jnp
from jax.experimental import pallas as pl
from jax.experimental.pallas import tpu as pltpu

LANE = 128
SUBLANE = 8
# Below this contraction size the first layer runs on the VPU as broadcast
# MACs (the module's real use case is K == 1); above it the MXU wins.
VPU_FIRST_LAYER_MAX_K = 4


def _round_up(n, m):
    return ((n + m - 1) // m) * m


def _pad_to(a, shape):
    pads = [(0, s - d) for d, s in zip(a.shape, shape)]
    return jnp.pad(a, pads)


class PreparedMLP(NamedTuple):
    """Device-resident, lane-padded parameters + static layout metadata.

    Build once with prepare_mlp_params() and reuse across mlp_forward calls;
    padding / stacking / dtype casts are NOT re-executed per call.
    """
    w_in: jax.Array                 # (in_features, D)  f32 (VPU path) or MXU dtype
    b_in: jax.Array                 # (1, D)            f32
    w_hid: Optional[jax.Array]      # (num_hidden, D, D) MXU dtype, or None
    b_hid: Optional[jax.Array]      # (num_hidden, 1, D) f32, or None
    w_out: jax.Array                # narrow: (1, D) f32 ; else (D, OUT_pad) MXU dtype
    b_out: jax.Array                # narrow: (1, 1) f32 ; else (1, OUT_pad) f32
    in_features: int
    out_features: int
    num_hidden: int
    D: int
    out_pad: int
    narrow_out: bool
    use_bf16: bool


def prepare_mlp_params(params, *, use_bf16=False):
    """One-time prep: zero-pad lane dims to multiples of 128, stack hidden
    layers into a single (nh, D, D) block, and cast MXU operands to their
    compute dtype.  Zero padding keeps the real output columns bit-exact."""
    assert len(params) >= 2
    f32 = jnp.float32
    mxu_dtype = jnp.bfloat16 if use_bf16 else f32

    in_features = params[0][0].shape[0]
    num_neurons = params[0][0].shape[1]
    out_features = params[-1][0].shape[1]
    num_hidden = len(params) - 2

    D = _round_up(num_neurons, LANE)
    out_pad = _round_up(out_features, LANE)
    narrow_out = (out_features == 1)

    # First layer.  Tiny K stays f32 (VPU path); larger K is stored in the
    # MXU dtype so the kernel does no per-tile casts.
    w_in = _pad_to(params[0][0].astype(f32), (in_features, D))
    if in_features > VPU_FIRST_LAYER_MAX_K:
        w_in = w_in.astype(mxu_dtype)
    b_in = _pad_to(params[0][1].reshape(1, -1).astype(f32), (1, D))

    # Hidden layers.
    if num_hidden > 0:
        w_hid = jnp.stack([_pad_to(w.astype(f32), (D, D)).astype(mxu_dtype)
                           for w, _ in params[1:-1]])
        b_hid = jnp.stack([_pad_to(b.reshape(1, -1).astype(f32), (1, D))
                           for _, b in params[1:-1]])
    else:
        w_hid = None
        b_hid = None

    # Output layer.
    if narrow_out:
        # out_features == 1: keep the weight as a (1, D) f32 row; the kernel
        # lane-reduces h * w_row and stores a narrow (tile_b, 1) block.
        w_out = _pad_to(params[-1][0].astype(f32).T, (1, D))
        b_out = params[-1][1].reshape(1, 1).astype(f32)
    else:
        w_out = _pad_to(params[-1][0].astype(f32), (D, out_pad)).astype(mxu_dtype)
        b_out = _pad_to(params[-1][1].reshape(1, -1).astype(f32), (1, out_pad))

    return PreparedMLP(w_in, b_in, w_hid, b_hid, w_out, b_out,
                       int(in_features), int(out_features), int(num_hidden),
                       int(D), int(out_pad), bool(narrow_out), bool(use_bf16))


def _mlp_fused_kernel(*refs, num_hidden, in_features, narrow_out, use_bf16):
    """Whole MLP for one batch tile; all parameters stay VMEM-resident.

    Lane dims were pre-padded to multiples of 128 by prepare_mlp_params();
    padded weight rows/cols and biases are zero, so real outputs are exact.
    """
    if num_hidden > 0:
        (x_ref, w_in_ref, b_in_ref, w_hid_ref, b_hid_ref,
         w_out_ref, b_out_ref, o_ref) = refs
    else:
        x_ref, w_in_ref, b_in_ref, w_out_ref, b_out_ref, o_ref = refs
        w_hid_ref = b_hid_ref = None

    dot_dtype = jnp.bfloat16 if use_bf16 else jnp.float32

    x = x_ref[...].astype(jnp.float32)                     # (TB, K)
    b_in = b_in_ref[...]                                   # (1, D)  f32

    if in_features <= VPU_FIRST_LAYER_MAX_K:
        # Tiny contraction (module's real case: K == 1): broadcast MACs on
        # the VPU instead of pushing a nearly empty tile through the MXU.
        h = jnp.broadcast_to(b_in, (x.shape[0], b_in.shape[1]))
        w_in = w_in_ref[...]                               # (K, D) f32
        for k in range(in_features):                       # static unroll
            h = h + x[:, k:k + 1] * w_in[k:k + 1, :]
    else:
        # Weights are stored in the MXU dtype already: no per-tile casts.
        h = jnp.dot(x.astype(dot_dtype), w_in_ref[...],
                    preferred_element_type=jnp.float32) + b_in
    h = jnp.tanh(h)                                        # EUP, f32

    # Hidden layers: static unroll, MXU matmuls with f32 accumulation.
    # NOTE: tanh stays f32 for exactness (v5e EUP has no bf16); on v6e/v7x a
    # bf16 tanh would roughly halve the EUP-bound portion if ever needed.
    for i in range(num_hidden):
        h = jnp.dot(h.astype(dot_dtype), w_hid_ref[i],
                    preferred_element_type=jnp.float32) + b_hid_ref[i]
        h = jnp.tanh(h)

    if narrow_out:
        # out_features == 1: lane-reduce h * w_row (VPU + XLU) and store a
        # narrow (TB, 1) block -> only the real bytes go back to HBM.
        y = jnp.sum(h * w_out_ref[...], axis=-1, keepdims=True) + b_out_ref[...]
    else:
        y = jnp.dot(h.astype(dot_dtype), w_out_ref[...],
                    preferred_element_type=jnp.float32) + b_out_ref[...]
    o_ref[...] = y.astype(o_ref.dtype)


_WEIGHT_PIPELINE_CACHE = []   # [mode], resolved lazily on first forward call


def _weight_pipeline_mode():
    """pl.Buffered(1) for block-invariant weights (halves their VMEM footprint
    vs. default double-buffering) if this JAX/Mosaic build supports it; None
    otherwise (graceful fallback, identical math)."""
    if _WEIGHT_PIPELINE_CACHE:
        return _WEIGHT_PIPELINE_CACHE[0]
    mode = None
    try:
        def probe(x_ref, w_ref, o_ref):
            o_ref[...] = x_ref[...] + w_ref[...]

        out = pl.pallas_call(
            probe,
            out_shape=jax.ShapeDtypeStruct((16, LANE), jnp.float32),
            grid_spec=pltpu.PrefetchScalarGridSpec(
                num_scalar_prefetch=0,
                grid=(2,),
                in_specs=[
                    pl.BlockSpec((8, LANE), lambda i: (i, 0)),
                    pl.BlockSpec((8, LANE), lambda i: (0, 0),
                                 pipeline_mode=pl.Buffered(1)),
                ],
                out_specs=pl.BlockSpec((8, LANE), lambda i: (i, 0)),
            ),
        )(jnp.zeros((16, LANE), jnp.float32), jnp.ones((8, LANE), jnp.float32))
        jax.block_until_ready(out)
        mode = pl.Buffered(1)
    except Exception:
        mode = None
    _WEIGHT_PIPELINE_CACHE.append(mode)
    return mode


def _default_num_tensorcores():
    """Best effort: 2 TensorCores per chip on v4/v7x (megacore), 1 on v5e/v6e."""
    try:
        kind = jax.devices()[0].device_kind.lower()
    except Exception:
        return 1
    return 2 if ("v7" in kind or "v4" in kind) else 1


def mlp_forward(prepared, x, *, tile_b=None, num_cores=None, max_tile_b=2048):
    """Fused single-pallas_call forward pass.

    prepared: PreparedMLP from prepare_mlp_params() (built once, reused).
    x:        (batch, in_features) array.  Output dtype follows x.dtype
              (compute is f32; non-f32 x downcasts the final store).
    tile_b:   batch tile.  Default: full padded batch (grid of 1) on
              single-TC chips; ~batch/2 on dual-TC chips so the "parallel"
              batch axis always yields one step per TensorCore.
    """
    p = prepared
    assert x.ndim == 2 and x.shape[1] == p.in_features
    B = x.shape[0]
    B8 = _round_up(B, SUBLANE)

    if tile_b is None:
        nc = _default_num_tensorcores() if num_cores is None else int(num_cores)
        if nc <= 1:
            tile_b = B8                                   # one serial grid step
        else:
            tile_b = _round_up(pl.cdiv(B8, nc), SUBLANE)  # >= nc grid steps
    tile_b = int(min(max(_round_up(int(tile_b), SUBLANE), SUBLANE), max_tile_b))
    B_pad = _round_up(B, tile_b)
    grid = (B_pad // tile_b,)

    x_p = x.astype(jnp.float32)
    if B_pad != B:
        x_p = jnp.pad(x_p, ((0, B_pad - B), (0, 0)))

    out_cols = 1 if p.narrow_out else p.out_pad

    # Block-invariant parameters: constant index_map; single-buffered when
    # pipeline_mode is supported by this build.
    wmode = _weight_pipeline_mode()

    def wspec(shape):
        imap = (lambda i: (0, 0)) if len(shape) == 2 else (lambda i: (0, 0, 0))
        if wmode is None:
            return pl.BlockSpec(shape, imap)
        return pl.BlockSpec(shape, imap, pipeline_mode=wmode)

    operands = [x_p, p.w_in, p.b_in]
    in_specs = [
        pl.BlockSpec((tile_b, p.in_features), lambda i: (i, 0)),
        wspec(p.w_in.shape),
        wspec(p.b_in.shape),
    ]
    if p.num_hidden > 0:
        operands += [p.w_hid, p.b_hid]
        in_specs += [wspec(p.w_hid.shape), wspec(p.b_hid.shape)]
    operands += [p.w_out, p.b_out]
    in_specs += [wspec(p.w_out.shape), wspec(p.b_out.shape)]

    kernel = functools.partial(_mlp_fused_kernel,
                               num_hidden=p.num_hidden,
                               in_features=p.in_features,
                               narrow_out=p.narrow_out,
                               use_bf16=p.use_bf16)

    # Advisory cost estimate (on the padded problem actually computed).
    out_layer_flops = 2 * p.D if p.narrow_out else 2 * p.D * p.out_pad
    flops = B_pad * (2 * p.in_features * p.D
                     + p.num_hidden * 2 * p.D * p.D
                     + out_layer_flops)
    transcendentals = B_pad * p.D * (p.num_hidden + 1)
    weight_bytes = sum(int(a.size) * a.dtype.itemsize for a in operands[1:])
    bytes_accessed = int(x_p.size) * 4 + weight_bytes + B_pad * out_cols * 4

    # VMEM budget: weights (single/double-buffered) + pipelined x/out tiles +
    # live f32 activations, with headroom; capped well under v7x's 64 MiB.
    wbuf = 1 if wmode is not None else 2
    act_bytes = 4 * tile_b * (p.in_features + out_cols + 2 * p.D)
    vmem_limit = int(min(48 * 1024 * 1024,
                         max(4 * 1024 * 1024,
                             wbuf * weight_bytes + 2 * act_bytes + (1 << 20))))

    y_pad = pl.pallas_call(
        kernel,
        out_shape=jax.ShapeDtypeStruct((B_pad, out_cols), x.dtype),
        grid_spec=pltpu.PrefetchScalarGridSpec(
            num_scalar_prefetch=0,
            grid=grid,
            in_specs=in_specs,
            out_specs=pl.BlockSpec((tile_b, out_cols), lambda i: (i, 0)),
        ),
        compiler_params=pltpu.CompilerParams(
            dimension_semantics=("parallel",),   # batch axis: megacore sharding
            vmem_limit_bytes=vmem_limit,
        ),
        cost_estimate=pl.CostEstimate(
            flops=int(flops),
            transcendentals=int(transcendentals),
            bytes_accessed=int(bytes_accessed),
        ),
    )(*operands)

    y = y_pad[:B] if B_pad != B else y_pad
    return y if p.narrow_out else y[:, :p.out_features]


def init_mlp_params(key, in_features, out_features, num_layers, num_neurons):
    """PyTorch-style uniform(-1/sqrt(fan_in), 1/sqrt(fan_in)) init.

    Layer structure mirrors the module: layer_input, (num_layers - 1) hidden
    layers, layer_output.  W has shape (in, out), b has shape (out,).
    """
    dims = [in_features] + [num_neurons] * num_layers + [out_features]
    params = []
    for fan_in, fan_out in zip(dims[:-1], dims[1:]):
        key, kw, kb = jax.random.split(key, 3)
        bound = float(fan_in) ** -0.5
        w = jax.random.uniform(kw, (fan_in, fan_out), jnp.float32, -bound, bound)
        b = jax.random.uniform(kb, (fan_out,), jnp.float32, -bound, bound)
        params.append((w, b))
    return params


def mlp_reference(params, x):
    """Pure-JAX reference (same math as the PyTorch forward)."""
    h = x
    n = len(params)
    for i, (w, b) in enumerate(params):
        h = h @ w + b[None, :]
        if i < n - 1:
            h = jnp.tanh(h)
    return h


if __name__ == "__main__":
    # Shapes consistent with the module's usage: scalar-in/scalar-out MLP,
    # num_layers=3, num_neurons=32, evaluated on a 1-D grid of points.
    in_features, out_features = 1, 1
    num_layers, num_neurons = 3, 32

    key = jax.random.PRNGKey(0)
    k_params, k_x = jax.random.split(key)
    params = init_mlp_params(k_params, in_features, out_features,
                             num_layers, num_neurons)

    # One-time parameter prep (padding / stacking / dtype), reused below.
    prepared = prepare_mlp_params(params)
    prepared_bf16 = prepare_mlp_params(params, use_bf16=True)

    # Small batch (single tile, grid of 1).
    x_small = jax.random.uniform(k_x, (8, in_features), jnp.float32, -1.0, 1.0)
    y_small = jax.block_until_ready(mlp_forward(prepared, x_small))
    ref_small = mlp_reference(params, x_small)
    assert y_small.shape == (8, out_features)
    assert jnp.allclose(y_small, ref_small, atol=1e-5, rtol=1e-5)

    # The module's real usage: x = arange(-L/2, L/2, dx) -> 1000 scalar points.
    # Auto tile: full batch on single-TC chips, ~batch/2 on dual-TC chips.
    x_grid = jnp.linspace(-1.0, 1.0, 1000, endpoint=False).reshape(-1, 1)
    y_grid = jax.block_until_ready(mlp_forward(prepared, x_grid))
    ref_grid = mlp_reference(params, x_grid)
    assert y_grid.shape == (1000, out_features)
    assert jnp.allclose(y_grid, ref_grid, atol=1e-5, rtol=1e-5)

    # Explicit multi-step grid (exercises batch padding 1000 -> 1024, grid=2).
    y_tiled = jax.block_until_ready(mlp_forward(prepared, x_grid, tile_b=512))
    assert y_tiled.shape == (1000, out_features)
    assert jnp.allclose(y_tiled, ref_grid, atol=1e-5, rtol=1e-5)

    # bf16 MXU operands (hidden weights stored in bf16 in HBM); accumulation,
    # bias and tanh stay f32, so only a modest tolerance loosening is needed.
    y_bf16 = jax.block_until_ready(mlp_forward(prepared_bf16, x_grid))
    assert jnp.allclose(y_bf16, ref_grid, atol=5e-2, rtol=5e-2)

    print("KERNEL_OK")
</pallas_src>

<mosaic_0001>
module attributes {stable_mosaic.version = 11 : i64} {
  func.func @probe(%arg0: i32, %arg1: memref<8x128xf32, #tpu.memory_space<vmem>>, %arg2: memref<8x128xf32, #tpu.memory_space<vmem>>, %arg3: memref<8x128xf32, #tpu.memory_space<vmem>>) attributes {dimension_semantics = [#tpu.dimension_semantics<arbitrary>], iteration_bounds = array<i64: 2>, scalar_prefetch = 0 : i64, scratch_operands = 0 : i64, tpu.core_type = #tpu.core_type<tc>, window_params = [{transform_indices = @transform_0, window_bounds = array<i64: 8, 128>}, {pipeline_mode = #tpu.pipeline_mode<synchronous>, transform_indices = @transform_1, window_bounds = array<i64: 8, 128>}, {transform_indices = @transform_2, window_bounds = array<i64: 8, 128>}]} {
    %c0 = arith.constant 0 : index
    %c0_0 = arith.constant 0 : index
    %0 = vector.load %arg1[%c0, %c0_0] : memref<8x128xf32, #tpu.memory_space<vmem>>, vector<8x128xf32>
    %c0_1 = arith.constant 0 : index
    %c0_2 = arith.constant 0 : index
    %1 = vector.load %arg2[%c0_1, %c0_2] : memref<8x128xf32, #tpu.memory_space<vmem>>, vector<8x128xf32>
    %2 = arith.addf %0, %1 : vector<8x128xf32>
    %c0_3 = arith.constant 0 : index
    %c0_4 = arith.constant 0 : index
    %3 = vector.load %arg3[%c0_3, %c0_4] : memref<8x128xf32, #tpu.memory_space<vmem>>, vector<8x128xf32>
    tpu.vector_store %arg3[%c0_3, %c0_4], %2 {strides = array<i32>} : memref<8x128xf32, #tpu.memory_space<vmem>>, vector<8x128xf32>,
    return
  }
  func.func @transform_0(%arg0: i32) -> (i32, i32) {
    %c0_i32 = arith.constant 0 : i32
    %c0_i32_0 = arith.constant 0 : i32
    return %arg0, %c0_i32 : i32, i32
  }
  func.func @transform_1(%arg0: i32) -> (i32, i32) {
    %c0_i32 = arith.constant 0 : i32
    %c0_i32_0 = arith.constant 0 : i32
    %c0_i32_1 = arith.constant 0 : i32
    return %c0_i32, %c0_i32_0 : i32, i32
  }
  func.func @transform_2(%arg0: i32) -> (i32, i32) {
    %c0_i32 = arith.constant 0 : i32
    %c0_i32_0 = arith.constant 0 : i32
    return %arg0, %c0_i32 : i32, i32
  }
}

module attributes {stable_mosaic.version = 11 : i64} {
  func.func @_mlp_fused_kernel(%arg0: i32, %arg1: memref<8x1xf32, #tpu.memory_space<vmem>>, %arg2: memref<1x128xf32, #tpu.memory_space<vmem>>, %arg3: memref<1x128xf32, #tpu.memory_space<vmem>>, %arg4: memref<2x128x128xf32, #tpu.memory_space<vmem>>, %arg5: memref<2x1x128xf32, #tpu.memory_space<vmem>>, %arg6: memref<1x128xf32, #tpu.memory_space<vmem>>, %arg7: memref<1x1xf32, #tpu.memory_space<vmem>>, %arg8: memref<8x1xf32, #tpu.memory_space<vmem>>) attributes {dimension_semantics = [#tpu.dimension_semantics<parallel>], iteration_bounds = array<i64: 1>, scalar_prefetch = 0 : i64, scratch_operands = 0 : i64, tpu.core_type = #tpu.core_type<tc>, window_params = [{transform_indices = @transform_0, window_bounds = array<i64: 8, 1>}, {pipeline_mode = #tpu.pipeline_mode<synchronous>, transform_indices = @transform_1, window_bounds = array<i64: 1, 128>}, {pipeline_mode = #tpu.pipeline_mode<synchronous>, transform_indices = @transform_2, window_bounds = array<i64: 1, 128>}, {pipeline_mode = #tpu.pipeline_mode<synchronous>, transform_indices = @transform_3, window_bounds = array<i64: 2, 128, 128>}, {pipeline_mode = #tpu.pipeline_mode<synchronous>, transform_indices = @transform_4, window_bounds = array<i64: 2, 1, 128>}, {pipeline_mode = #tpu.pipeline_mode<synchronous>, transform_indices = @transform_5, window_bounds = array<i64: 1, 128>}, {pipeline_mode = #tpu.pipeline_mode<synchronous>, transform_indices = @transform_6, window_bounds = array<i64: 1, 1>}, {transform_indices = @transform_7, window_bounds = array<i64: 8, 1>}]} {
    %c0 = arith.constant 0 : index
    %c0_0 = arith.constant 0 : index
    %0 = vector.load %arg1[%c0, %c0_0] : memref<8x1xf32, #tpu.memory_space<vmem>>, vector<8x1xf32>
    %c0_1 = arith.constant 0 : index
    %c0_2 = arith.constant 0 : index
    %1 = vector.load %arg3[%c0_1, %c0_2] : memref<1x128xf32, #tpu.memory_space<vmem>>, vector<1x128xf32>
    %2 = vector.shape_cast %1 : vector<1x128xf32> to vector<1x128xf32>
    %3 = vector.broadcast %2 : vector<1x128xf32> to vector<8x128xf32>
    %c0_3 = arith.constant 0 : index
    %c0_4 = arith.constant 0 : index
    %4 = vector.load %arg2[%c0_3, %c0_4] : memref<1x128xf32, #tpu.memory_space<vmem>>, vector<1x128xf32>
    %5 = vector.broadcast %0 : vector<8x1xf32> to vector<8x128xf32>
    %6 = vector.broadcast %4 : vector<1x128xf32> to vector<8x128xf32>
    %7 = arith.mulf %5, %6 : vector<8x128xf32>
    %8 = arith.addf %3, %7 : vector<8x128xf32>
    %9 = math.tanh %8 : vector<8x128xf32>
    %c0_5 = arith.constant 0 : index
    %c0_6 = arith.constant 0 : index
    %c0_7 = arith.constant 0 : index
    %10 = vector.load %arg4[%c0_5, %c0_6, %c0_7] : memref<2x128x128xf32, #tpu.memory_space<vmem>>, vector<1x128x128xf32>
    %11 = vector.shape_cast %10 : vector<1x128x128xf32> to vector<128x128xf32>
    %cst = arith.constant dense<0.000000e+00> : vector<8x128xf32>
    %12 = tpu.matmul %9, %11, %cst {dimension_numbers = #tpu.dot_dimension_numbers<[1], [0], [0], [1], [0, 0, 1, 1], [], []>} : vector<8x128xf32>, vector<128x128xf32>, vector<8x128xf32> -> vector<8x128xf32>
    %c0_8 = arith.constant 0 : index
    %c0_9 = arith.constant 0 : index
    %c0_10 = arith.constant 0 : index
    %13 = vector.load %arg5[%c0_8, %c0_9, %c0_10] : memref<2x1x128xf32, #tpu.memory_space<vmem>>, vector<1x1x128xf32>
    %14 = vector.shape_cast %13 : vector<1x1x128xf32> to vector<1x128xf32>
    %15 = vector.broadcast %14 : vector<1x128xf32> to vector<8x128xf32>
    %16 = arith.addf %12, %15 : vector<8x128xf32>
    %17 = math.tanh %16 : vector<8x128xf32>
    %c1 = arith.constant 1 : index
    %c0_11 = arith.constant 0 : index
    %c0_12 = arith.constant 0 : index
    %18 = vector.load %arg4[%c1, %c0_11, %c0_12] : memref<2x128x128xf32, #tpu.memory_space<vmem>>, vector<1x128x128xf32>
    %19 = vector.shape_cast %18 : vector<1x128x128xf32> to vector<128x128xf32>
    %cst_13 = arith.constant dense<0.000000e+00> : vector<8x128xf32>
    %20 = tpu.matmul %17, %19, %cst_13 {dimension_numbers = #tpu.dot_dimension_numbers<[1], [0], [0], [1], [0, 0, 1, 1], [], []>} : vector<8x128xf32>, vector<128x128xf32>, vector<8x128xf32> -> vector<8x128xf32>
    %c1_14 = arith.constant 1 : index
    %c0_15 = arith.constant 0 : index
    %c0_16 = arith.constant 0 : index
    %21 = vector.load %arg5[%c1_14, %c0_15, %c0_16] : memref<2x1x128xf32, #tpu.memory_space<vmem>>, vector<1x1x128xf32>
    %22 = vector.shape_cast %21 : vector<1x1x128xf32> to vector<1x128xf32>
    %23 = vector.broadcast %22 : vector<1x128xf32> to vector<8x128xf32>
    %24 = arith.addf %20, %23 : vector<8x128xf32>
    %25 = math.tanh %24 : vector<8x128xf32>
    %c0_17 = arith.constant 0 : index
    %c0_18 = arith.constant 0 : index
    %26 = vector.load %arg6[%c0_17, %c0_18] : memref<1x128xf32, #tpu.memory_space<vmem>>, vector<1x128xf32>
    %27 = vector.broadcast %26 : vector<1x128xf32> to vector<8x128xf32>
    %28 = arith.mulf %25, %27 : vector<8x128xf32>
    %cst_19 = arith.constant dense<0.000000e+00> : vector<8xf32>
    %29 = vector.multi_reduction <add>, %28, %cst_19 [1] : vector<8x128xf32> to vector<8xf32>
    %30 = vector.shape_cast %29 : vector<8xf32> to vector<8x1xf32>
    %c0_20 = arith.constant 0 : index
    %c0_21 = arith.constant 0 : index
    %31 = vector.load %arg7[%c0_20, %c0_21] : memref<1x1xf32, #tpu.memory_space<vmem>>, vector<1x1xf32>
    %32 = vector.broadcast %31 : vector<1x1xf32> to vector<8x1xf32>
    %33 = arith.addf %30, %32 : vector<8x1xf32>
    %c0_22 = arith.constant 0 : index
    %c0_23 = arith.constant 0 : index
    %34 = vector.load %arg8[%c0_22, %c0_23] : memref<8x1xf32, #tpu.memory_space<vmem>>, vector<8x1xf32>
    tpu.vector_store %arg8[%c0_22, %c0_23], %33 {strides = array<i32>} : memref<8x1xf32, #tpu.memory_space<vmem>>, vector<8x1xf32>,
    return
  }
  func.func @transform_0(%arg0: i32) -> (i32, i32) {
    %c0_i32 = arith.constant 0 : i32
    %c0_i32_0 = arith.constant 0 : i32
    return %arg0, %c0_i32 : i32, i32
  }
  func.func @transform_1(%arg0: i32) -> (i32, i32) {
    %c0_i32 = arith.constant 0 : i32
    %c0_i32_0 = arith.constant 0 : i32
    %c0_i32_1 = arith.constant 0 : i32
    return %c0_i32, %c0_i32_0 : i32, i32
  }
  func.func @transform_2(%arg0: i32) -> (i32, i32) {
    %c0_i32 = arith.constant 0 : i32
    %c0_i32_0 = arith.constant 0 : i32
    %c0_i32_1 = arith.constant 0 : i32
    return %c0_i32, %c0_i32_0 : i32, i32
  }
  func.func @transform_3(%arg0: i32) -> (i32, i32, i32) {
    %c0_i32 = arith.constant 0 : i32
    %c0_i32_0 = arith.constant 0 : i32
    %c0_i32_1 = arith.constant 0 : i32
    %c0_i32_2 = arith.constant 0 : i32
    return %c0_i32, %c0_i32_0, %c0_i32_1 : i32, i32, i32
  }
  func.func @transform_4(%arg0: i32) -> (i32, i32, i32) {
    %c0_i32 = arith.constant 0 : i32
    %c0_i32_0 = arith.constant 0 : i32
    %c0_i32_1 = arith.constant 0 : i32
    %c0_i32_2 = arith.constant 0 : i32
    return %c0_i32, %c0_i32_0, %c0_i32_1 : i32, i32, i32
  }
  func.func @transform_5(%arg0: i32) -> (i32, i32) {
    %c0_i32 = arith.constant 0 : i32
    %c0_i32_0 = arith.constant 0 : i32
    %c0_i32_1 = arith.constant 0 : i32
    return %c0_i32, %c0_i32_0 : i32, i32
  }
  func.func @transform_6(%arg0: i32) -> (i32, i32) {
    %c0_i32 = arith.constant 0 : i32
    %c0_i32_0 = arith.constant 0 : i32
    %c0_i32_1 = arith.constant 0 : i32
    return %c0_i32, %c0_i32_0 : i32, i32
  }
  func.func @transform_7(%arg0: i32) -> (i32, i32) {
    %c0_i32 = arith.constant 0 : i32
    %c0_i32_0 = arith.constant 0 : i32
    return %arg0, %c0_i32 : i32, i32
  }
}

</mosaic_0001>

<bundles_post_ra>
// kernel: tpu_custom_call.1
= control target key start
LH: loop header
LB: loop body
LE: loop exit
PB: predicated region body
PF: predicated region fallthrough
CT: control target
= control target key end

     0   :  { %7 = vsyncpa [#allocation3], 0  ;;  %s633_s0 = inlined_call_operand.hbm [shape: f32[16,128], index: 0, kind: input, shape index: {}]   ;;  %s634_s1 = inlined_call_operand.hbm [shape: f32[8,128], index: 1, kind: input, shape index: {}]   ;;  %s635_s2 = inlined_call_operand.hbm [shape: f32[16,128], index: 2, kind: output, shape index: {}]  }
   0x1   :  { %9 = vsyncpa [#allocation3 + $0x1], 0 }
   0x2   :  { %10 = vsyncpa [#allocation6], 0 }
   0x3   :  { %11 = vsyncpa [#allocation4], 0 }
   0x4   :  { %13 = vsyncpa [#allocation4 + $0x1], 0  ;;  %s495_s9 = smov 0   ;;  %s497_s10 = smov 0  }
   0x5   :  { %s499_s11 = smov 0   ;;  %s501_s12 = smov 0  }
   0x6 LB: > { %s516_s13 = sadd.s32 4294967295, %s477_s12   ;;  %s276_s14 = sadd.s32 4294967294, %s477_s12   ;;  %s477_s12 = sphi %s501_s12, %s645_s12   ;;  %s473_s11 = sphi %s499_s11, %s644_s11   ;;  %s469_s10 = sphi %s497_s10, %s643_s10   ;;  %s465_s9 = sphi %s495_s9, %s642_s9  }
   0x7   : > { %p39_p0 = scmp.ne.s32.totalorder %s469_s10, %s465_s9  ;;  %p40_p1 = scmp.eq.s32.totalorder %s516_s13, 0 }
   0x8   : > { %p84_p2 = scmp.eq.s32.totalorder %s516_s13, 1  ;;  %p90_p3 = scmp.eq.s32.totalorder %s276_s14, 1 }
   0x9   : > { %p525_p4 = por %p40_p1, %p39_p0  ;;  %p277_p5 = scmp.ge.s32.totalorder %s477_s12, 1 }
   0xa   : > { %p530_p6 = por %p90_p3, %p39_p0  ;;  %p97_p7 = scmp.lt.s32.totalorder %s477_s12, 3 }
   0xb   : > { %s109_s19 = sshll.u32 %s634_s1, 4  ;;  %s479_s21 = smov [#allocation5]   ;;  %s110_s19 = int_to_ptr.hbm [resolvable:$true] %s109_s19 }
   0xc   : > { %p538_p8 = pnand %p277_p5, %p97_p7  ;;  %s111_s22 = sshll.u32 %s479_s21, 4  ;;  %s112_s22 = int_to_ptr.vmem [resolvable:$true] %s111_s22 }
   0xd   : > { %s548_s23 = sadd.s32 1, %s477_s12   ;;  %s26_s24 = sadd.s32 1, %s473_s11 }
   0xe   : > { %p298_p10 = pneg %p538_p8  ;;  %s23_s25 = ssub.s32 %s477_s12, %s548_s23 }
   0xf   : > { %p24_p12 = scmp.eq.s32.totalorder %s23_s25, 0  ;;  %p33_p13 = scmp.ne.s32.totalorder %s473_s11, %s469_s10 }
  0x10   : > { %p299_p11 = pnand %p298_p10, %p40_p1  ;;  %p34_p0 = scmp.eq.s32.totalorder %s477_s12, 0 }
  0x11   : > { %s557_s26 = scalar_select %p24_p12, %s473_s11, %s26_s24  }
  0x12   : > { %301 = dma.hbm_to_vmem [thread:$0]  (!%p299_p11), %s110_s19, 128, %s112_s22, [#allocation6]  }
  0x13   : > { %p561_p3 = por %p84_p2, %p33_p13  ;;  %p311_p5 = scmp.lt.s32.totalorder %s477_s12, 2 }
  0x14   : > { %s122_s28 = sand.u32 1, %s473_s11   ;;  %s281_s29 = sshll.u32 %s477_s12, 3 }
  0x15   : > { %p35_p7 = por %p34_p0, %p33_p13  ;;  %s280_s30 = sshll.u32 %s122_s28, 3 }
  0x16   : > { %s130_s5 = scalar_lea.hbm %s633_s0, %s281_s29  ;;  %s126_s7 = scalar_lea.vmem [#allocation2], %s280_s30 }
  0x17   : > { %s132_s6 = sshll.u32 %s130_s5, 4  ;;  %s134_s8 = sshll.u32 %s126_s7, 4  ;;  %s133_s6 = int_to_ptr.hbm [resolvable:$true] %s132_s6  ;;  %s135_s8 = int_to_ptr.vmem [resolvable:$true] %s134_s8 }
  0x18   : > { %p571_p10 = pnand %p311_p5, %p35_p7  ;;  %s123_s17 = scalar_lea.sflag [#allocation3], %s122_s28 }
  0x19   : > { %s377_s18 = sshra.s32 %s133_s6, 4  ;;  %s384_s24 = scalar_lea.hbm %s633_s0, 16  ;;  %s378_s18 = int_to_ptr.hbm [resolvable:$true] %s377_s18 }
  0x1a   : > { %s379_s19 = scalar_lea.hbm %s378_s18, 8  ;;  %p381_p11 = pneg %p571_p10 }
  0x1b   : > { %p380_p2 = scmp.ne.s32.totalorder %s378_s18, %s379_s19  ;;  %p385_p0 = scmp.lt.s32.totalorder %s378_s18, %s633_s0 }
  0x1c   : > { %p386_p5 = scmp.lt.s32.totalorder %s384_s24, %s379_s19 }
  0x1d   : > { %p382_p12 = pnand %p381_p11, %p380_p2 }
  0x1e   : > { %p387_p7 = por %p386_p5, %p385_p0 }
  0x1f   : > { %p383_p13 = pneg %p382_p12 }
  0x21   : > { %p388_p9 = pnand %p387_p7, %p383_p13 }
  0x23   : > { %391 = shalt.err (!%p388_p9)
}
  0x24   : > { %305 = dma.hbm_to_vmem [thread:$0]  (!%p571_p10), %s133_s6, 128, %s135_s8, %s123_s17  }
  0x25   : > { %143 = sbr.rel (%p538_p8) target bundleno = 60 (0x3c), region = 28  ;;  %s588_s28 = sand.u32 (!%p538_p8), 1, %s469_s10  }
  0x26   : > { %s283_s30 = sshll.u32 (!%p538_p8), %s588_s28, 3  ;;  %s146_s3 = scalar_lea.sflag (!%p538_p8), [#allocation3], %s588_s28 }
  0x27   : > { %s149_s4 = scalar_lea.vmem (!%p538_p8), [#allocation2], %s283_s30 }
  0x2a   : > { %452 = dma.done.wait (%p525_p4), %s146_s3, 128  }
  0x2b   : > { %454 = vsyncadd (%p525_p4), %s146_s3, 4294967168 }
  0x2c   : > { %456 = dma.done.wait (%p40_p1), [#allocation6], 128  }
  0x2d   : > { %458 = vsyncadd (%p40_p1), [#allocation6], 4294967168  ;;  %s287_s20 = sshll.u32 %s516_s13, 3  ;;  %s175_s8 = scalar_lea.vmem [#allocation7], %s283_s30  ;;  %v176_v0 = vld [vmem:[%s149_s4] sm:$0xff]  ;;  %v177_v1 = vld [vmem:[#allocation5] sm:$0xff] }
  0x2e   : > { %s191_s7 = scalar_lea.hbm %s635_s2, %s287_s20  ;;  %s193_s14 = sshll.u32 %s175_s8, 4  ;;  %v178_v2 = vadd.f32 %v177_v1, %v176_v0  ;;  %s194_s14 = int_to_ptr.vmem [resolvable:$true] %s193_s14 }
  0x2f   : > { %s195_s17 = sshll.u32 %s191_s7, 4  ;;  %s181_s15 = scalar_lea.sflag [#allocation4], %s588_s28  ;;  %s196_s17 = int_to_ptr.hbm [resolvable:$true] %s195_s17 }
  0x30   : > { %179 = vst [vmem:[%s175_s8] sm:$0xff] %v178_v2  ;;  %s421_s18 = sshra.s32 %s196_s17, 4  ;;  %s427_s22 = scalar_lea.hbm %s635_s2, 16  ;;  %s422_s18 = int_to_ptr.hbm [resolvable:$true] %s421_s18 }
  0x31   : > { %s423_s19 = scalar_lea.hbm %s422_s18, 8  ;;  %p428_p9 = scmp.lt.s32.totalorder %s422_s18, %s635_s2 }
  0x32   : > { %p424_p1 = scmp.ne.s32.totalorder %s422_s18, %s423_s19  ;;  %p429_p10 = scmp.lt.s32.totalorder %s427_s22, %s423_s19 }
  0x34   : > { %p425_p4 = pnand %p424_p1, %p561_p3  ;;  %p430_p2 = por %p429_p10, %p428_p9 }
  0x36   : > { %p426_p8 = pneg %p425_p4 }
  0x38   : > { %p431_p11 = pnand %p430_p2, %p426_p8 }
  0x3a   : > { %434 = shalt.err (!%p431_p11)
}
  0x3b   : > { %296 = dma.vmem_to_hbm [thread:$0]  (%p561_p3), %s194_s14, 128, %s196_s17, %s181_s15  }
  0x3c PF: > { %s207_s29 = sand.u32 1, %s465_s9   ;;  %p641_p12 = scmp.ge.s32.totalorder %s477_s12, 2 }
  0x3d   : > { %s208_s28 = scalar_lea.sflag [#allocation4], %s207_s29 }
  0x3e   : > { %p307_p13 = pnand %p641_p12, %p530_p6 }
  0x40   : > { %p308_p0 = pneg %p307_p13 }
  0x42   : > { %460 = dma.done.wait (%p308_p0), %s208_s28, 128  }
  0x43   : > { %462 = vsyncadd (%p308_p0), %s208_s28, 4294967168  ;;  %p16_p5 = scmp.ge.s32.totalorder %s548_s23, 4   ;;  %s642_s9 = smov %s469_s10 }
  0x44   : > { %s643_s10 = smov %s473_s11  ;;  %s644_s11 = smov %s557_s26 }
  0x45   : > { %s645_s12 = smov %s548_s23  ;;  %18 = sbr.rel (!%p16_p5) target bundleno = 6 (0x6), region = 77 }
  0x4a   :  { %214 = vsyncpa [#allocation3], 1 }
  0x4b   :  { %216 = vsyncpa [#allocation3 + $0x1], 1 }
  0x4c   :  { %217 = vsyncpa [#allocation6], 1 }
  0x4d   :  { %218 = vsyncpa [#allocation4], 1 }
  0x4e   :  { %220 = vsyncpa [#allocation4 + $0x1], 1 }

// kernel: tpu_custom_call.1
= control target key start
LH: loop header
LB: loop body
LE: loop exit
PB: predicated region body
PF: predicated region fallthrough
CT: control target
= control target key end

     0   :  { %s279_s0 = inlined_call_operand.vmem [shape: f32[8,1], index: 0, kind: input, shape index: {}]   ;;  %s280_s1 = inlined_call_operand.vmem [shape: f32[1,128], index: 1, kind: input, shape index: {}]   ;;  %s281_s2 = inlined_call_operand.vmem [shape: f32[1,128], index: 2, kind: input, shape index: {}]   ;;  %s282_s3 = inlined_call_operand.hbm [shape: f32[2,128,128], index: 3, kind: input, shape index: {}]   ;;  %s283_s4 = inlined_call_operand.vmem [shape: f32[2,1,128], index: 4, kind: input, shape index: {}]   ;;  %s284_s5 = inlined_call_operand.vmem [shape: f32[1,128], index: 5, kind: input, shape index: {}]   ;;  %s285_s6 = inlined_call_operand.<no memory space> [shape: f32[1,1], index: 6, kind: input, shape index: {}]   ;;  %s286_s7 = inlined_call_operand.vmem [shape: f32[8,1], index: 7, kind: output, shape index: {}]  }
   0x1   :  { %v12_v0 = vstv %s285_s6 }
   0x2   :  { %13 = vst [vmem:[#allocation2] sm:$0x1] %v12_v0 }
   0x3   :  { %14 = vsyncpa [#allocation4], 0  ;;  %s25_s28 = sshll.u32 %s282_s3, 4  ;;  %s208_s29 = smov [#allocation3]   ;;  %s26_s28 = int_to_ptr.hbm [resolvable:$true] %s25_s28 }
   0x4   :  { %s27_s30 = sshll.u32 %s208_s29, 4  ;;  %s209_s8 = smov 128   ;;  %s28_s30 = int_to_ptr.vmem [resolvable:$true] %s27_s30 }
   0x5   :  { %s210_s9 = smov 8  }
   0x6   :  { %33 = dma.hbm_to_vmem [thread:$0]  %s26_s28, 4096, %s28_s30, [#allocation4], %s209_s8, %s209_s8, %s210_s9  }
   0x7   :  { %206 = dma.done.wait [#allocation4], 4096  }
   0x8   :  { %207 = vsyncadd [#allocation4], 4294963200  ;;  %v211_v1 = vmov 0   ;;  %v44_v2 = vld [vmem:[%s279_s0] sm:$0xff]  ;;  %v75_v4 = vld [vmem:[#allocation3 + $0x70] sm:$0xff]  ;;  %vm157_vm0 = vcmask 7168  }
   0x9   :  { %169 = vset.pattern.permute.xlu0 %v211_v1  ;;  %v76_v3 = vld [vmem:[#allocation3 + $0x78] sm:$0xff]  ;;  %v74_v5 = vld [vmem:[#allocation3 + $0x68] sm:$0xff]  ;;  %v73_v6 = vld [vmem:[#allocation3 + $0x60] sm:$0xff] }
   0xa   :  { %52 = vperm.xlu0 %169, %v44_v2   ;;  %81 = vmatpush.msra.mxu0 %v76_v3  ;;  %v72_v7 = vld [vmem:[#allocation3 + $0x58] sm:$0xff]  ;;  %v71_v8 = vld [vmem:[#allocation3 + $0x50] sm:$0xff]  ;;  %v70_v9 = vld [vmem:[#allocation3 + $0x48] sm:$0xff] }
   0xb   :  { %v69_v10 = vld [vmem:[#allocation3 + $0x40] sm:$0xff]  ;;  %v68_v11 = vld [vmem:[#allocation3 + $0x38] sm:$0xff]  ;;  %v67_v12 = vld [vmem:[#allocation3 + $0x30] sm:$0xff] }
   0xc   :  { %82 = vmatpush.msra.mxu0 %v75_v4  ;;  %v66_v13 = vld [vmem:[#allocation3 + $0x28] sm:$0xff]  ;;  %v65_v14 = vld [vmem:[#allocation3 + $0x20] sm:$0xff]  ;;  %v64_v15 = vld [vmem:[#allocation3 + $0x18] sm:$0xff] }
   0xd   :  { %v63_v16 = vld [vmem:[#allocation3 + $0x10] sm:$0xff]  ;;  %v62_v17 = vld [vmem:[#allocation3 + $0x8] sm:$0xff]  ;;  %v61_v18 = vld [vmem:[#allocation3] sm:$0xff] }
   0xe   :  { %83 = vmatpush.msra.mxu0 %v74_v5  ;;  %v118_v19 = vld [vmem:[#allocation3 + $0xf8] sm:$0xff]  ;;  %v117_v20 = vld [vmem:[#allocation3 + $0xf0] sm:$0xff]  ;;  %v116_v21 = vld [vmem:[#allocation3 + $0xe8] sm:$0xff] }
   0xf   :  { %124 = vmatpush.msra.mxu1 %v118_v19  ;;  %v115_v22 = vld [vmem:[#allocation3 + $0xe0] sm:$0xff]  ;;  %v114_v23 = vld [vmem:[#allocation3 + $0xd8] sm:$0xff]  ;;  %v113_v24 = vld [vmem:[#allocation3 + $0xd0] sm:$0xff] }
  0x10   :  { %84 = vmatpush.msra.mxu0 %v73_v6  ;;  %v112_v25 = vld [vmem:[#allocation3 + $0xc8] sm:$0xff]  ;;  %v111_v26 = vld [vmem:[#allocation3 + $0xc0] sm:$0xff]  ;;  %v110_v27 = vld [vmem:[#allocation3 + $0xb8] sm:$0xff] }
  0x11   :  { %125 = vmatpush.msra.mxu1 %v117_v20  ;;  %v109_v28 = vld [vmem:[#allocation3 + $0xb0] sm:$0xff]  ;;  %v171_v29 = vld [vmem:[%s280_s1] ss:$0 sm:$0xff]  ;;  %v108_v30 = vld [vmem:[#allocation3 + $0xa8] sm:$0xff] }
  0x12   :  { %85 = vmatpush.msra.mxu0 %v72_v7  ;;  %v170_v31 = vld [vmem:[%s281_s2] ss:$0 sm:$0xff]  ;;  %v107_v36 = vld [vmem:[#allocation3 + $0xa0] sm:$0xff]  ;;  %v105_v38 = vld [vmem:[#allocation3 + $0x90] sm:$0xff] }
  0x13   :  { %126 = vmatpush.msra.mxu1 %v116_v21  ;;  %v106_v37 = vld [vmem:[#allocation3 + $0x98] sm:$0xff]  ;;  %v104_v39 = vld [vmem:[#allocation3 + $0x88] sm:$0xff]  ;;  %v103_v40 = vld [vmem:[#allocation3 + $0x80] sm:$0xff] }
  0x14   :  { %86 = vmatpush.msra.mxu0 %v71_v8  ;;  %v172_v41 = vld [vmem:[%s283_s4] ss:$0 sm:$0xff]  ;;  %v173_v45 = vld [vmem:[%s283_s4 + $0x1] ss:$0 sm:$0xff] }
  0x15   :  { %127 = vmatpush.msra.mxu1 %v115_v22  ;;  %v174_v48 = vld [vmem:[%s284_s5] ss:$0 sm:$0xff] }
  0x16   :  { %87 = vmatpush.msra.mxu0 %v70_v9  ;;  %v175_v51 = vld [vmem:[#allocation2] ss:$0 sm:$0xff] }
  0x17   :  { %128 = vmatpush.msra.mxu1 %v114_v23 }
  0x18   :  { %88 = vmatpush.msra.mxu0 %v69_v10 }
  0x19   :  { %129 = vmatpush.msra.mxu1 %v113_v24 }
  0x1a   :  { %89 = vmatpush.msra.mxu0 %v68_v11 }
  0x1b   :  { %130 = vmatpush.msra.mxu1 %v112_v25 }
  0x1c   :  { %90 = vmatpush.msra.mxu0 %v67_v12 }
  0x1d   :  { %131 = vmatpush.msra.mxu1 %v111_v26 }
  0x1e   :  { %91 = vmatpush.msra.mxu0 %v66_v13 }
  0x1f   :  { %132 = vmatpush.msra.mxu1 %v110_v27 }
  0x20   :  { %92 = vmatpush.msra.mxu0 %v65_v14 }
  0x21   :  { %133 = vmatpush.msra.mxu1 %v109_v28 }
  0x22   :  { %93 = vmatpush.msra.mxu0 %v64_v15 }
  0x23   :  { %134 = vmatpush.msra.mxu1 %v108_v30 }
  0x24   :  { %94 = vmatpush.msra.mxu0 %v63_v16 }
  0x25   :  { %135 = vmatpush.msra.mxu1 %v107_v36 }
  0x26   :  { %95 = vmatpush.msra.mxu0 %v62_v17 }
  0x27   :  { %136 = vmatpush.msra.mxu1 %v106_v37 }
  0x28   :  { %96 = vmatpush.msra.mxu0 %v61_v18 }
  0x29   :  { %137 = vmatpush.msra.mxu1 %v105_v38 }
  0x2b   :  { %138 = vmatpush.msra.mxu1 %v104_v39 }
  0x2d   :  { %139 = vmatpush.msra.mxu1 %v103_v40 }
  0x7c   :  { %v53_v32 = vpop.permute.xlu0 %52 }
  0x7d   :  { %v58_v33 = vmul.f32 %v171_v29, %v53_v32 }
  0x7f   :  { %v59_v34 = vadd.f32 %v170_v31, %v58_v33 }
  0x81   :  { %176 = vtanh.f32 %v59_v34 }
  0x87   :  { %v177_v35 = vpop.eup %176 }
  0x88   :  { %97 = vmatmul.f32.vlgmr.msra.gmra.mxu0 %v177_v35 }
 0x105   :  { %v98_v42 = vpop.f32.mrf.mxu0 }
 0x106   :  { %v99_v43 = vadd.f32 %v172_v41, %v98_v42 }
 0x108   :  { %178 = vtanh.f32 %v99_v43 }
 0x10e   :  { %v179_v44 = vpop.eup %178 }
 0x10f   :  { %140 = vmatmul.f32.vlgmr.msra.gmra.mxu1 %v179_v44 }
 0x18c   :  { %v141_v46 = vpop.f32.mrf.mxu1 }
 0x18d   :  { %v142_v47 = vadd.f32 %v173_v45, %v141_v46 }
 0x18f   :  { %180 = vtanh.f32 %v142_v47 }
 0x195   :  { %v181_v49 = vpop.eup %180 }
 0x196   :  { %v149_v50 = vmul.f32 %v181_v49, %v174_v48 }
 0x198   :  { %150 = vadd.xlane.f32.xlu0 %v149_v50 }
 0x20b   :  { %v151_v52 = vpop.xlane.xlu0 %150 }
 0x20c   :  { %v156_v53 = vadd.f32 %v175_v51, %v151_v52 }
 0x20e   :  { %158 = vst.msk [vmem:[%s286_s7] sm:$0xff] %vm157_vm0, %v156_v53 }
 0x20f   :  { %163 = vsyncpa [#allocation4], 1 }

</bundles_post_ra>
